<compile_context>
chip_gen: v5e
topology: v5e:2x2
jax: 0.10.0
libtpu: 0.0.40
codegen_flags: <defaults>
</compile_context>

<pallas_src>
import jax
import jax.numpy as jnp
from jax.experimental import pallas as pl
from jax.experimental.pallas import tpu as pltpu


def hswish_kernel(x_ref, o_ref):
    # Elementwise: x * relu6(x + 3) / 6, computed in f32, stored in out dtype.
    x = x_ref[...].astype(jnp.float32)
    y = x * (jnp.clip(x + 3.0, 0.0, 6.0) * (1.0 / 6.0))
    o_ref[...] = y.astype(o_ref.dtype)


def _round_up(n, m):
    return -(-n // m) * m


def hswish(x, *, lanes=1024, max_rows_per_tile=512):
    """Elementwise Hswish on an array of any shape/dtype (f32/bf16)."""
    orig_shape = x.shape
    n = 1
    for d in orig_shape:
        n *= int(d)

    # Lane-dense 2-D view: (rows, lanes) with lanes a large multiple of 128.
    rows = -(-n // lanes)
    if rows >= max_rows_per_tile:
        tile_rows = max_rows_per_tile              # multiple of 8
    else:
        tile_rows = _round_up(rows, 8)             # small input: single tile
    rows_padded = _round_up(rows, tile_rows)
    n_padded = rows_padded * lanes

    flat = x.reshape(-1)
    if n_padded != n:
        flat = jnp.pad(flat, (0, n_padded - n))    # hswish(0) == 0; sliced off
    x2d = flat.reshape(rows_padded, lanes)

    grid = (rows_padded // tile_rows,)
    out2d = pl.pallas_call(
        hswish_kernel,
        out_shape=jax.ShapeDtypeStruct((rows_padded, lanes), x.dtype),
        grid=grid,
        in_specs=[pl.BlockSpec((tile_rows, lanes), lambda i: (i, 0))],
        out_specs=pl.BlockSpec((tile_rows, lanes), lambda i: (i, 0)),
        compiler_params=pltpu.CompilerParams(
            dimension_semantics=("parallel",),
            vmem_limit_bytes=32 * 1024 * 1024,
        ),
    )(x2d)

    return out2d.reshape(-1)[:n].reshape(orig_shape)


def hswish_ref(x):
    # Pure-JAX reference matching the PyTorch forward exactly:
    # inp * relu6(inp + 3) / 6
    xf = x.astype(jnp.float32)
    return (xf * jnp.clip(xf + 3.0, 0.0, 6.0) / 6.0).astype(x.dtype)


if __name__ == "__main__":
    # Small shape consistent with a MobileNetV3-small activation: NCHW.
    B, C, H, W = 2, 16, 16, 16
    key = jax.random.PRNGKey(0)
    x = jax.random.normal(key, (B, C, H, W), dtype=jnp.float32) * 3.0

    out = hswish(x)
    out = jax.block_until_ready(out)

    ref = hswish_ref(x)
    assert out.shape == x.shape
    assert out.dtype == x.dtype
    assert jnp.allclose(out, ref, atol=1e-6, rtol=1e-6), "mismatch vs reference"

    print("KERNEL_OK")
</pallas_src>

<mosaic_0001>
module attributes {stable_mosaic.version = 11 : i64} {
  func.func @hswish_kernel(%arg0: i32, %arg1: memref<8x1024xf32, #tpu.memory_space<vmem>>, %arg2: memref<8x1024xf32, #tpu.memory_space<vmem>>) attributes {dimension_semantics = [#tpu.dimension_semantics<parallel>], iteration_bounds = array<i64: 1>, scalar_prefetch = 0 : i64, scratch_operands = 0 : i64, tpu.core_type = #tpu.core_type<tc>, window_params = [{transform_indices = @transform_0, window_bounds = array<i64: 8, 1024>}, {transform_indices = @transform_1, window_bounds = array<i64: 8, 1024>}]} {
    %c0 = arith.constant 0 : index
    %c0_0 = arith.constant 0 : index
    %0 = vector.load %arg1[%c0, %c0_0] : memref<8x1024xf32, #tpu.memory_space<vmem>>, vector<8x1024xf32>
    %cst = arith.constant 3.000000e+00 : f32
    %1 = vector.broadcast %cst : f32 to vector<8x1024xf32>
    %2 = arith.addf %0, %1 : vector<8x1024xf32>
    %cst_1 = arith.constant 0.000000e+00 : f32
    %cst_2 = arith.constant 6.000000e+00 : f32
    %3 = vector.broadcast %cst_1 : f32 to vector<8x1024xf32>
    %4 = arith.maximumf %3, %2 : vector<8x1024xf32>
    %5 = vector.broadcast %cst_2 : f32 to vector<8x1024xf32>
    %6 = arith.minimumf %5, %4 : vector<8x1024xf32>
    %cst_3 = arith.constant 0.166666672 : f32
    %7 = vector.broadcast %cst_3 : f32 to vector<8x1024xf32>
    %8 = arith.mulf %6, %7 : vector<8x1024xf32>
    %9 = arith.mulf %0, %8 : vector<8x1024xf32>
    %c0_4 = arith.constant 0 : index
    %c0_5 = arith.constant 0 : index
    %10 = vector.load %arg2[%c0_4, %c0_5] : memref<8x1024xf32, #tpu.memory_space<vmem>>, vector<8x1024xf32>
    tpu.vector_store %arg2[%c0_4, %c0_5], %9 {strides = array<i32>} : memref<8x1024xf32, #tpu.memory_space<vmem>>, vector<8x1024xf32>,
    return
  }
  func.func @transform_0(%arg0: i32) -> (i32, i32) {
    %c0_i32 = arith.constant 0 : i32
    %c0_i32_0 = arith.constant 0 : i32
    return %arg0, %c0_i32 : i32, i32
  }
  func.func @transform_1(%arg0: i32) -> (i32, i32) {
    %c0_i32 = arith.constant 0 : i32
    %c0_i32_0 = arith.constant 0 : i32
    return %arg0, %c0_i32 : i32, i32
  }
}

</mosaic_0001>

<bundles_post_ra>
// kernel: tpu_custom_call.1
= control target key start
LH: loop header
LB: loop body
LE: loop exit
PB: predicated region body
PF: predicated region fallthrough
CT: control target
= control target key end

     0   :  { %6 = vsyncpa [#allocation3], 0  ;;  %s168_s0 = inlined_call_operand.hbm [shape: f32[8,1024], index: 0, kind: input, shape index: {}]   ;;  %s169_s1 = inlined_call_operand.hbm [shape: f32[8,1024], index: 1, kind: output, shape index: {}]  }
   0x1   :  { %7 = vsyncpa [#allocation4], 0  ;;  %s13_s8 = sshll.u32 %s168_s0, 4  ;;  %s150_s9 = smov [#allocation2]   ;;  %s14_s8 = int_to_ptr.hbm [resolvable:$true] %s13_s8 }
   0x2   :  { %s15_s10 = sshll.u32 %s150_s9, 4  ;;  %s16_s10 = int_to_ptr.vmem [resolvable:$true] %s15_s10 }
   0x3   :  { %18 = dma.hbm_to_vmem [thread:$0]  %s14_s8, 1024, %s16_s10, [#allocation3]  }
   0x4   :  { %146 = dma.done.wait [#allocation3], 1024  }
   0x5   :  { %147 = vsyncadd [#allocation3], 4294966272  ;;  %v23_v0 = vld [vmem:[#allocation2] sm:$0xff]  ;;  %v24_v1 = vld [vmem:[#allocation2 + $0x8] sm:$0xff]  ;;  %s151_s0 = smov [#allocation5]   ;;  %s86_s14 = sshll.u32 %s169_s1, 4  ;;  %s87_s14 = int_to_ptr.hbm [resolvable:$true] %s86_s14 }
   0x6   :  { %v25_v2 = vld [vmem:[#allocation2 + $0x10] sm:$0xff]  ;;  %v31_v3 = vadd.f32 3.0, %v23_v0  ;;  %v32_v4 = vadd.f32 3.0, %v24_v1  ;;  %v26_v6 = vld [vmem:[#allocation2 + $0x18] sm:$0xff]  ;;  %v27_v7 = vld [vmem:[#allocation2 + $0x20] sm:$0xff]  ;;  %s84_s11 = sshll.u32 %s151_s0, 4  ;;  %s85_s11 = int_to_ptr.vmem [resolvable:$true] %s84_s11 }
   0x7   :  { %v33_v5 = vadd.f32 3.0, %v25_v2  ;;  %v28_v8 = vld [vmem:[#allocation2 + $0x28] sm:$0xff]  ;;  %v34_v9 = vadd.f32 3.0, %v26_v6  ;;  %v35_v10 = vadd.f32 3.0, %v27_v7  ;;  %v29_v12 = vld [vmem:[#allocation2 + $0x30] sm:$0xff]  ;;  %v30_v13 = vld [vmem:[#allocation2 + $0x38] sm:$0xff] }
   0x8   :  { %v36_v11 = vadd.f32 3.0, %v28_v8  ;;  %v39_v14 = vmax.f32 %v31_v3, 0.0  ;;  %v40_v15 = vmax.f32 %v32_v4, 0.0  ;;  %v37_v17 = vadd.f32 3.0, %v29_v12 }
   0x9   :  { %v41_v16 = vmax.f32 %v33_v5, 0.0  ;;  %v42_v18 = vmax.f32 %v34_v9, 0.0  ;;  %v43_v19 = vmax.f32 %v35_v10, 0.0  ;;  %v38_v21 = vadd.f32 3.0, %v30_v13 }
   0xa   :  { %v44_v20 = vmax.f32 %v36_v11, 0.0  ;;  %v47_v22 = vmin.f32 %v39_v14, 6.0  ;;  %v48_v23 = vmin.f32 %v40_v15, 6.0  ;;  %v45_v25 = vmax.f32 %v37_v17, 0.0 }
   0xb   :  { %v49_v24 = vmin.f32 %v41_v16, 6.0  ;;  %v50_v26 = vmin.f32 %v42_v18, 6.0  ;;  %v51_v27 = vmin.f32 %v43_v19, 6.0  ;;  %v46_v29 = vmax.f32 %v38_v21, 0.0 }
   0xc   :  { %v52_v28 = vmin.f32 %v44_v20, 6.0  ;;  %v55_v30 = vmul.f32 0.16666667, %v47_v22  ;;  %v56_v31 = vmul.f32 0.16666667, %v48_v23  ;;  %v53_v39 = vmin.f32 %v45_v25, 6.0 }
   0xd   :  { %v57_v32 = vmul.f32 0.16666667, %v49_v24  ;;  %v58_v33 = vmul.f32 0.16666667, %v50_v26  ;;  %v59_v34 = vmul.f32 0.16666667, %v51_v27 }
   0xe   :  { %v60_v35 = vmul.f32 0.16666667, %v52_v28  ;;  %v63_v36 = vmul.f32 %v55_v30, %v23_v0  ;;  %v64_v37 = vmul.f32 %v56_v31, %v24_v1  ;;  %v54_v41 = vmin.f32 %v46_v29, 6.0 }
   0xf   :  { %v65_v38 = vmul.f32 %v57_v32, %v25_v2  ;;  %v66_v40 = vmul.f32 %v58_v33, %v26_v6  ;;  %v67_v42 = vmul.f32 %v59_v34, %v27_v7  ;;  %v61_v43 = vmul.f32 0.16666667, %v53_v39 }
  0x10   :  { %71 = vst [vmem:[#allocation5] sm:$0xff] %v63_v36  ;;  %v68_v44 = vmul.f32 %v60_v35, %v28_v8  ;;  %v62_v45 = vmul.f32 0.16666667, %v54_v41 }
  0x11   :  { %72 = vst [vmem:[#allocation5 + $0x8] sm:$0xff] %v64_v37  ;;  %v69_v46 = vmul.f32 %v61_v43, %v29_v12 }
  0x12   :  { %73 = vst [vmem:[#allocation5 + $0x10] sm:$0xff] %v65_v38  ;;  %v70_v47 = vmul.f32 %v62_v45, %v30_v13 }
  0x13   :  { %74 = vst [vmem:[#allocation5 + $0x18] sm:$0xff] %v66_v40 }
  0x14   :  { %75 = vst [vmem:[#allocation5 + $0x20] sm:$0xff] %v67_v42 }
  0x15   :  { %76 = vst [vmem:[#allocation5 + $0x28] sm:$0xff] %v68_v44 }
  0x16   :  { %77 = vst [vmem:[#allocation5 + $0x30] sm:$0xff] %v69_v46 }
  0x17   :  { %78 = vst [vmem:[#allocation5 + $0x38] sm:$0xff] %v70_v47 }
  0x18   :  { %89 = dma.vmem_to_hbm [thread:$0]  %s85_s11, 1024, %s87_s14, [#allocation4]  }
  0x19   :  { %148 = dma.done.wait [#allocation4], 1024  }
  0x1a   :  { %149 = vsyncadd [#allocation4], 4294966272 }
  0x1b   :  { %94 = vsyncpa [#allocation3], 1 }
  0x1c   :  { %95 = vsyncpa [#allocation4], 1 }

</bundles_post_ra>
